<compile_context>
chip_gen: v7x
topology: tpu7x:2x2x1
jax: 0.10.0
libtpu: 0.0.40
codegen_flags: <defaults>
</compile_context>

<pallas_src>
import jax
import jax.numpy as jnp
from jax.experimental import pallas as pl
from jax.experimental.pallas import tpu as pltpu

HIDDEN = 64
LANE = 128
NEG_BIG = -1e30  # baked into padded b2 columns -> exp underflows to 0


def _round_up(n, m):
    return ((n + m - 1) // m) * m


def _make_policy_kernel(out_size):
    def policy_kernel(x_ref, w1_ref, b1_ref, w2_ref, b2_ref, o_ref):
        # x_ref : (bm, in)      f32   (cast to bf16 here, hidden under DMA)
        # w1_ref: (in, hid)     bf16  (resident)
        # b1_ref: (1, hid)      f32   (resident)
        # w2_ref: (hid, out_p)  bf16  (resident, out_p = round_up(out, 128))
        # b2_ref: (1, out_p)    f32   (resident, padded cols = -1e30)
        # o_ref : (bm, out)     f32   (narrow output, no lane padding written)
        x = x_ref[...].astype(w1_ref.dtype)

        # fc1 (bf16 x bf16 -> f32 accumulate) + bias + ReLU
        h = jnp.dot(x, w1_ref[...], preferred_element_type=jnp.float32) + b1_ref[...]
        h = jnp.maximum(h, 0.0)

        # fc2 (bf16 activations on the MXU, f32 accumulate) + bias
        # padded logit lanes get 0*W + (-1e30) from b2 -> masked for free
        logits = (
            jnp.dot(h.astype(w2_ref.dtype), w2_ref[...],
                    preferred_element_type=jnp.float32)
            + b2_ref[...]
        )

        # numerically-stable softmax along last dim (f32 throughout)
        m = jnp.max(logits, axis=-1, keepdims=True)
        e = jnp.exp(logits - m)                       # padded lanes -> exp(-1e30) == 0
        denom = jnp.sum(e, axis=-1, keepdims=True)
        probs = e * pl.reciprocal(denom)              # exact (kernel is DMA-bound)

        # store only the real output columns
        o_ref[...] = probs[:, :out_size].astype(o_ref.dtype)

    return policy_kernel


def prepare_params(w1, b1, w2, b2):
    """Hoisted, call-once padding/casting of the (tiny, resident) weights."""
    in_size, hidden = w1.shape
    out_size = w2.shape[1]
    out_p = _round_up(out_size, LANE)

    w1b = w1.astype(jnp.bfloat16)                                    # (in, hid)
    b1p = jnp.reshape(b1, (1, hidden)).astype(jnp.float32)           # (1, hid)
    w2b = jnp.zeros((hidden, out_p), jnp.bfloat16).at[:, :out_size].set(
        w2.astype(jnp.bfloat16))                                     # (hid, out_p)
    b2p = jnp.full((1, out_p), NEG_BIG, jnp.float32).at[:, :out_size].set(
        jnp.reshape(b2, (1, out_size)).astype(jnp.float32))          # (1, out_p)
    return w1b, b1p, w2b, b2p, out_size


def policy_network_prepared(x, w1b, b1p, w2b, b2p, out_size, *, bm=1024):
    """x: (B, in) f32. Weights already prepared via prepare_params."""
    B, in_size = x.shape
    hidden = w1b.shape[1]
    out_p = w2b.shape[1]

    # batch tile: multiple of 8 sublanes, capped at bm; grid covers padded batch
    bm = min(bm, _round_up(B, 8))
    Bp = _round_up(B, bm)
    if Bp != B:
        x = jnp.zeros((Bp, in_size), x.dtype).at[:B, :].set(x)

    grid = (Bp // bm,)
    out = pl.pallas_call(
        _make_policy_kernel(out_size),
        out_shape=jax.ShapeDtypeStruct((Bp, out_size), jnp.float32),
        grid_spec=pltpu.PrefetchScalarGridSpec(
            num_scalar_prefetch=0,
            grid=grid,
            in_specs=[
                pl.BlockSpec((bm, in_size), lambda i: (i, 0)),     # x tile over batch
                pl.BlockSpec((in_size, hidden), lambda i: (0, 0)),  # W1 resident
                pl.BlockSpec((1, hidden), lambda i: (0, 0)),        # b1 resident
                pl.BlockSpec((hidden, out_p), lambda i: (0, 0)),    # W2 resident
                pl.BlockSpec((1, out_p), lambda i: (0, 0)),         # b2 resident
            ],
            # narrow output: last dim equals full array dim -> (8,128) rule ok
            out_specs=pl.BlockSpec((bm, out_size), lambda i: (i, 0)),
        ),
        compiler_params=pltpu.CompilerParams(
            dimension_semantics=("parallel",),
        ),
    )(x, w1b, b1p, w2b, b2p)

    return out[:B]


def policy_network(x, w1, b1, w2, b2, *, bm=1024):
    """Convenience one-shot path (pads/casts weights every call)."""
    w1b, b1p, w2b, b2p, out_size = prepare_params(w1, b1, w2, b2)
    return policy_network_prepared(x, w1b, b1p, w2b, b2p, out_size, bm=bm)


def init_params(key, input_size, output_size):
    # Deterministic init mimicking nn.Linear (uniform +- 1/sqrt(fan_in)).
    k1, k2, k3, k4 = jax.random.split(key, 4)
    bound1 = 1.0 / jnp.sqrt(input_size)
    bound2 = 1.0 / jnp.sqrt(HIDDEN)
    w1 = jax.random.uniform(k1, (input_size, HIDDEN), jnp.float32, -bound1, bound1)
    b1 = jax.random.uniform(k2, (1, HIDDEN), jnp.float32, -bound1, bound1)
    w2 = jax.random.uniform(k3, (HIDDEN, output_size), jnp.float32, -bound2, bound2)
    b2 = jax.random.uniform(k4, (1, output_size), jnp.float32, -bound2, bound2)
    return w1, b1, w2, b2


if __name__ == "__main__":
    key = jax.random.PRNGKey(0)
    kx, kp = jax.random.split(key)

    B, input_size, output_size = 8, 32, 8
    x = jax.random.normal(kx, (B, input_size), jnp.float32)
    w1, b1, w2, b2 = init_params(kp, input_size, output_size)

    # Hoisted weight preparation (run once, reused across calls).
    w1b, b1p, w2b, b2p, out_size = prepare_params(w1, b1, w2, b2)

    out = policy_network_prepared(x, w1b, b1p, w2b, b2p, out_size)
    out = jax.block_until_ready(out)
    assert out.shape == (B, output_size)

    # Reference emulating the kernel's bf16-input / f32-accumulate numerics.
    xb = x.astype(jnp.bfloat16)
    h_ref = jnp.maximum(
        jnp.dot(xb, w1.astype(jnp.bfloat16),
                preferred_element_type=jnp.float32) + b1, 0.0)
    logits_ref = jnp.dot(h_ref.astype(jnp.bfloat16), w2.astype(jnp.bfloat16),
                         preferred_element_type=jnp.float32) + b2
    ref = jax.nn.softmax(logits_ref, axis=-1)

    assert jnp.allclose(out, ref, atol=5e-3, rtol=5e-3), "mismatch vs reference"
    assert jnp.allclose(jnp.sum(out, axis=-1), 1.0, atol=1e-4), \
        "softmax rows must sum to 1"

    print("KERNEL_OK")
</pallas_src>

<mosaic_0001>
module attributes {stable_mosaic.version = 11 : i64} {
  func.func @policy_kernel(%arg0: i32, %arg1: memref<8x32xf32, #tpu.memory_space<vmem>>, %arg2: memref<32x64xbf16, #tpu.memory_space<vmem>>, %arg3: memref<1x64xf32, #tpu.memory_space<vmem>>, %arg4: memref<64x128xbf16, #tpu.memory_space<vmem>>, %arg5: memref<1x128xf32, #tpu.memory_space<vmem>>, %arg6: memref<8x8xf32, #tpu.memory_space<vmem>>) attributes {dimension_semantics = [#tpu.dimension_semantics<parallel>], iteration_bounds = array<i64: 1>, scalar_prefetch = 0 : i64, scratch_operands = 0 : i64, tpu.core_type = #tpu.core_type<tc>, window_params = [{transform_indices = @transform_0, window_bounds = array<i64: 8, 32>}, {pipeline_mode = #tpu.pipeline_mode<synchronous>, transform_indices = @transform_1, window_bounds = array<i64: 32, 64>}, {pipeline_mode = #tpu.pipeline_mode<synchronous>, transform_indices = @transform_2, window_bounds = array<i64: 1, 64>}, {pipeline_mode = #tpu.pipeline_mode<synchronous>, transform_indices = @transform_3, window_bounds = array<i64: 64, 128>}, {pipeline_mode = #tpu.pipeline_mode<synchronous>, transform_indices = @transform_4, window_bounds = array<i64: 1, 128>}, {transform_indices = @transform_5, window_bounds = array<i64: 8, 8>}]} {
    %c0 = arith.constant 0 : index
    %c0_0 = arith.constant 0 : index
    %0 = vector.load %arg1[%c0, %c0_0] : memref<8x32xf32, #tpu.memory_space<vmem>>, vector<8x32xf32>
    %1 = arith.truncf %0 : vector<8x32xf32> to vector<8x32xbf16>
    %c0_1 = arith.constant 0 : index
    %c0_2 = arith.constant 0 : index
    %2 = vector.load %arg2[%c0_1, %c0_2] : memref<32x64xbf16, #tpu.memory_space<vmem>>, vector<32x64xbf16>
    %cst = arith.constant dense<0.000000e+00> : vector<8x64xf32>
    %3 = tpu.matmul %1, %2, %cst {dimension_numbers = #tpu.dot_dimension_numbers<[1], [0], [0], [1], [0, 0, 1, 1], [], []>} : vector<8x32xbf16>, vector<32x64xbf16>, vector<8x64xf32> -> vector<8x64xf32>
    %c0_3 = arith.constant 0 : index
    %c0_4 = arith.constant 0 : index
    %4 = vector.load %arg3[%c0_3, %c0_4] : memref<1x64xf32, #tpu.memory_space<vmem>>, vector<1x64xf32>
    %5 = vector.broadcast %4 : vector<1x64xf32> to vector<8x64xf32>
    %6 = arith.addf %3, %5 : vector<8x64xf32>
    %cst_5 = arith.constant 0.000000e+00 : f32
    %7 = vector.broadcast %cst_5 : f32 to vector<8x64xf32>
    %8 = arith.maximumf %6, %7 : vector<8x64xf32>
    %9 = arith.truncf %8 : vector<8x64xf32> to vector<8x64xbf16>
    %c0_6 = arith.constant 0 : index
    %c0_7 = arith.constant 0 : index
    %10 = vector.load %arg4[%c0_6, %c0_7] : memref<64x128xbf16, #tpu.memory_space<vmem>>, vector<64x128xbf16>
    %cst_8 = arith.constant dense<0.000000e+00> : vector<8x128xf32>
    %11 = tpu.matmul %9, %10, %cst_8 {dimension_numbers = #tpu.dot_dimension_numbers<[1], [0], [0], [1], [0, 0, 1, 1], [], []>} : vector<8x64xbf16>, vector<64x128xbf16>, vector<8x128xf32> -> vector<8x128xf32>
    %c0_9 = arith.constant 0 : index
    %c0_10 = arith.constant 0 : index
    %12 = vector.load %arg5[%c0_9, %c0_10] : memref<1x128xf32, #tpu.memory_space<vmem>>, vector<1x128xf32>
    %13 = vector.broadcast %12 : vector<1x128xf32> to vector<8x128xf32>
    %14 = arith.addf %11, %13 : vector<8x128xf32>
    %cst_11 = arith.constant dense<0xFF800000> : vector<8xf32>
    %15 = vector.multi_reduction <maximumf>, %14, %cst_11 [1] : vector<8x128xf32> to vector<8xf32>
    %16 = vector.shape_cast %15 : vector<8xf32> to vector<8x1xf32>
    %17 = vector.broadcast %16 : vector<8x1xf32> to vector<8x128xf32>
    %18 = arith.subf %14, %17 : vector<8x128xf32>
    %19 = math.exp %18 : vector<8x128xf32>
    %cst_12 = arith.constant dense<0.000000e+00> : vector<8xf32>
    %20 = vector.multi_reduction <add>, %19, %cst_12 [1] : vector<8x128xf32> to vector<8xf32>
    %21 = vector.shape_cast %20 : vector<8xf32> to vector<8x1xf32>
    %22 = tpu.reciprocal %21 : vector<8x1xf32> -> vector<8x1xf32>
    %23 = vector.broadcast %22 : vector<8x1xf32> to vector<8x128xf32>
    %24 = arith.mulf %19, %23 : vector<8x128xf32>
    %25 = vector.extract_strided_slice %24 {offsets = [0, 0], sizes = [8, 8], strides = [1, 1]} : vector<8x128xf32> to vector<8x8xf32>
    %c0_13 = arith.constant 0 : index
    %c0_14 = arith.constant 0 : index
    %26 = vector.load %arg6[%c0_13, %c0_14] : memref<8x8xf32, #tpu.memory_space<vmem>>, vector<8x8xf32>
    tpu.vector_store %arg6[%c0_13, %c0_14], %25 {strides = array<i32>} : memref<8x8xf32, #tpu.memory_space<vmem>>, vector<8x8xf32>,
    return
  }
  func.func @transform_0(%arg0: i32) -> (i32, i32) {
    %c0_i32 = arith.constant 0 : i32
    %c0_i32_0 = arith.constant 0 : i32
    return %arg0, %c0_i32 : i32, i32
  }
  func.func @transform_1(%arg0: i32) -> (i32, i32) {
    %c0_i32 = arith.constant 0 : i32
    %c0_i32_0 = arith.constant 0 : i32
    %c0_i32_1 = arith.constant 0 : i32
    return %c0_i32, %c0_i32_0 : i32, i32
  }
  func.func @transform_2(%arg0: i32) -> (i32, i32) {
    %c0_i32 = arith.constant 0 : i32
    %c0_i32_0 = arith.constant 0 : i32
    %c0_i32_1 = arith.constant 0 : i32
    return %c0_i32, %c0_i32_0 : i32, i32
  }
  func.func @transform_3(%arg0: i32) -> (i32, i32) {
    %c0_i32 = arith.constant 0 : i32
    %c0_i32_0 = arith.constant 0 : i32
    %c0_i32_1 = arith.constant 0 : i32
    return %c0_i32, %c0_i32_0 : i32, i32
  }
  func.func @transform_4(%arg0: i32) -> (i32, i32) {
    %c0_i32 = arith.constant 0 : i32
    %c0_i32_0 = arith.constant 0 : i32
    %c0_i32_1 = arith.constant 0 : i32
    return %c0_i32, %c0_i32_0 : i32, i32
  }
  func.func @transform_5(%arg0: i32) -> (i32, i32) {
    %c0_i32 = arith.constant 0 : i32
    %c0_i32_0 = arith.constant 0 : i32
    return %arg0, %c0_i32 : i32, i32
  }
}

</mosaic_0001>

<bundles_post_ra>
// kernel: tpu_custom_call.1
= control target key start
LH: loop header
LB: loop body
LE: loop exit
PB: predicated region body
PF: predicated region fallthrough
CT: control target
= control target key end

     0   :  { %10 = vsyncpa [#allocation3], 0  ;;  %s490_s0 = inlined_call_operand.hbm [shape: f32[8,32], index: 0, kind: input, shape index: {}]   ;;  %s491_s1 = inlined_call_operand.hbm [shape: bf16[32,64], index: 1, kind: input, shape index: {}]   ;;  %s492_s2 = inlined_call_operand.vmem [shape: f32[1,64], index: 2, kind: input, shape index: {}]   ;;  %s493_s3 = inlined_call_operand.hbm [shape: bf16[64,128], index: 3, kind: input, shape index: {}]   ;;  %s494_s4 = inlined_call_operand.vmem [shape: f32[1,128], index: 4, kind: input, shape index: {}]   ;;  %s495_s5 = inlined_call_operand.hbm [shape: f32[8,8], index: 5, kind: output, shape index: {}]  }
   0x1   :  { %11 = vsyncpa [#allocation6], 0 }
   0x2   :  { %12 = vsyncpa [#allocation4], 0  ;;  %s392_s18 = smov [#allocation5]   ;;  %s298_s22 = scalar_lea.hbm %s491_s1, 256 }
   0x3   :  { %s28_s19 = sshll.u32 %s392_s18, 4  ;;  %p299_p0 = scmp.ne.s32.totalorder %s491_s1, %s298_s22  ;;  %s29_s19 = int_to_ptr.vmem [resolvable:$true] %s28_s19 }
   0x4   :  { %p302_p1 = scmp.lt.u32.totalorder %s298_s22, %s491_s1 }
   0x6   :  { %p304_p2 = pnand %p302_p1, %p299_p0 }
   0x8   :  { %307 = shalt.err (!%p304_p2)
}
   0x9   :  { %s308_s27 = scalar_lea.vmem %s29_s19, 256  ;;  %p313_p4 = scmp.lt.s32.totalorder %s29_s19, %s29_s19 }
   0xa   :  { %p309_p3 = scmp.ne.s32.totalorder %s29_s19, %s308_s27  ;;  %p314_p5 = scmp.lt.s32.totalorder %s308_s27, %s308_s27 }
   0xc   :  { %p315_p6 = por %p314_p5, %p313_p4 }
   0xe   :  { %p316_p7 = pnand %p315_p6, %p309_p3 }
  0x10   :  { %319 = shalt.err (!%p316_p7)
}
  0x11   :  { %s393_s28 = smov 64   ;;  %s394_s29 = smov 4  }
  0x12   :  { %34 = dma.hbm_to_vmem [thread:$0]  %s491_s1, 256, %s29_s19, [#allocation6], %s393_s28, %s393_s28, %s394_s29  }
  0x13   :  { %s395_s7 = smov [#allocation2]   ;;  %s396_s9 = smov [#allocation7]  }
  0x14   :  { %s19_s8 = sshll.u32 %s395_s7, 4  ;;  %s42_s10 = sshll.u32 %s396_s9, 4  ;;  %s20_s8 = int_to_ptr.vmem [resolvable:$true] %s19_s8  ;;  %s43_s10 = int_to_ptr.vmem [resolvable:$true] %s42_s10 }
  0x15   :  { %s320_s13 = scalar_lea.hbm %s490_s0, 128 }
  0x16   :  { %p321_p8 = scmp.ne.s32.totalorder %s490_s0, %s320_s13  ;;  %p324_p9 = scmp.lt.u32.totalorder %s320_s13, %s490_s0 }
  0x18   :  { %p326_p10 = pnand %p324_p9, %p321_p8 }
  0x1a   :  { %329 = shalt.err (!%p326_p10)
}
  0x1b   :  { %s330_s1 = scalar_lea.vmem %s20_s8, 128  ;;  %p335_p12 = scmp.lt.s32.totalorder %s20_s8, %s20_s8 }
  0x1c   :  { %p331_p11 = scmp.ne.s32.totalorder %s20_s8, %s330_s1  ;;  %p336_p13 = scmp.lt.s32.totalorder %s330_s1, %s330_s1 }
  0x1e   :  { %p337_p0 = por %p336_p13, %p335_p12 }
  0x20   :  { %p338_p1 = pnand %p337_p0, %p331_p11 }
  0x22   :  { %341 = shalt.err (!%p338_p1)
}
  0x23   :  { %22 = dma.hbm_to_vmem [thread:$0]  %s490_s0, 128, %s20_s8, [#allocation3]  }
  0x24   :  { %s342_s22 = scalar_lea.hbm %s493_s3, 512 }
  0x25   :  { %p343_p2 = scmp.ne.s32.totalorder %s493_s3, %s342_s22  ;;  %p346_p3 = scmp.lt.u32.totalorder %s342_s22, %s493_s3 }
  0x27   :  { %p348_p4 = pnand %p346_p3, %p343_p2 }
  0x29   :  { %351 = shalt.err (!%p348_p4)
}
  0x2a   :  { %s352_s27 = scalar_lea.vmem %s43_s10, 512  ;;  %p357_p6 = scmp.lt.s32.totalorder %s43_s10, %s43_s10 }
  0x2b   :  { %p353_p5 = scmp.ne.s32.totalorder %s43_s10, %s352_s27  ;;  %p358_p7 = scmp.lt.s32.totalorder %s352_s27, %s352_s27 }
  0x2d   :  { %p359_p8 = por %p358_p7, %p357_p6 }
  0x2f   :  { %p360_p9 = pnand %p359_p8, %p353_p5 }
  0x31   :  { %363 = shalt.err (!%p360_p9)
}
  0x32   :  { %48 = dma.hbm_to_vmem [thread:$0]  %s493_s3, 512, %s43_s10, [#allocation6], %s393_s28, %s393_s28, %s394_s29  }
  0x33   :  { %386 = dma.done.wait [#allocation3], 128  }
  0x34   :  { %387 = vsyncadd [#allocation3], 4294967168 }
  0x35   :  { %388 = dma.done.wait [#allocation6], 768  }
  0x36   :  { %389 = vsyncadd [#allocation6], 4294966528  ;;  %v397_v0 = vmov 0.0   ;;  %vm398_vm0 = vmmov 0   ;;  %v288_v1 = vld [vmem:[#allocation5] sm:$0xff]   ;;  %v289_v2 = vld [vmem:[#allocation5 + $0x8] sm:$0xff]  }
  0x37   :  { %260 = vmatprep.subr.bf16.mxu0 %v397_v0  ;;  %264 = vmatprep.mubr.msk.bf16.mxu0 %vm398_vm0, %v397_v0  ;;  %v61_v3 = vld [vmem:[#allocation2] sm:$0xff]  ;;  %v290_v4 = vld [vmem:[#allocation7] sm:$0xff]   ;;  %vm86_vm1 = vcmask 261120   ;;  %v292_v7 = vld [vmem:[#allocation7 + $0x10] sm:$0xff]   ;;  %vm171_vm2 = vcmask 523264   ;;  %vm224_vm3 = vcmask 64512  }
  0x38   :  { %268 = vmatprep.subr.bf16.mxu1 %v397_v0  ;;  %276 = vmatprep.mubr.msk.bf16.mxu1 %vm398_vm0, %v397_v0  ;;  %v291_v5 = vld [vmem:[#allocation7 + $0x8] sm:$0xff]   ;;  %v62_v6 = vpack.c.bf16 %v61_v3, %v61_v3  ;;  %v293_v8 = vld [vmem:[#allocation7 + $0x18] sm:$0xff]  }
  0x39   :  { %261 = vmatpush3.bf16.msra.mxu0 %v288_v1  ;;  %269 = vmatpush3.bf16.msra.mxu1 %v290_v4  ;;  %v242_v9 = vld [vmem:[%s492_s2] ss:$0 sm:$0xff]  ;;  %s399_s2 = smov [#allocation8]  }
  0x3a   :  { %262 = vmatprep.subr.bf16.mxu0 %v397_v0  ;;  %270 = vmatprep.subr.bf16.mxu1 %v397_v0  ;;  %v246_v17 = vld [vmem:[%s494_s4] ss:$0 sm:$0xff]  ;;  %s232_s7 = sshll.u32 %s399_s2, 4  ;;  %s233_s7 = int_to_ptr.vmem [resolvable:$true] %s232_s7 }
  0x3b   :  { %s364_s4 = scalar_lea.vmem %s233_s7, 128  ;;  %p369_p11 = scmp.lt.s32.totalorder %s233_s7, %s233_s7 }
  0x3c   :  { %p365_p10 = scmp.ne.s32.totalorder %s233_s7, %s364_s4  ;;  %p370_p12 = scmp.lt.s32.totalorder %s364_s4, %s364_s4 }
  0x3d   :  { %263 = vmatpush3.bf16.msra.mxu0 %v289_v2  ;;  %271 = vmatpush3.bf16.msra.mxu1 %v291_v5 }
  0x3e   :  { %272 = vmatprep.subr.bf16.mxu1 %v397_v0  ;;  %p371_p13 = por %p370_p12, %p369_p11 }
  0x40   :  { %265 = vmatmul.mubr.msk.bf16.vlgmr.msra.gmra.mrb[0].mxu0 %vm86_vm1, %v62_v6  ;;  %p372_p0 = pnand %p371_p13, %p365_p10 }
  0x41   :  { %273 = vmatpush3.bf16.msra.mxu1 %v292_v7 }
  0x42   :  { %274 = vmatprep.subr.bf16.mxu1 %v397_v0 }
  0x45   :  { %275 = vmatpush3.bf16.msra.mxu1 %v293_v8 }
 0x113   :  { %v124_v10 = vpop.f32.mrb[0].mxu0 }
 0x114   :  { %v125_v11 = vadd.f32 %v242_v9, %v124_v10  ;;  %v266_v12 = vpop.f32.mrb[1].mxu0 }
 0x115   :  { %v127_v13 = vpop.f32.mrb[2].mxu0 }
 0x116   :  { %v130_v14 = vmax.f32 %v125_v11, 0.0  ;;  %v267_v15 = vpop.f32.mrb[3].mxu0 }
 0x118   :  { %v131_v16 = vpack.c.bf16 %v130_v14, %v130_v14 }
 0x11a   :  { %277 = vmatmul.mubr.msk.bf16.vlgmr.msra.gmra.mrb[0].mxu1 %vm171_vm2, %v131_v16 }
 0x1ed   :  { %v209_v18 = vpop.f32.mrb[0].mxu1 }
 0x1ee   :  { %v210_v19 = vadd.f32 %v246_v17, %v209_v18  ;;  %v278_v20 = vpop.f32.mrb[1].mxu1 }
 0x1ef   :  { %v212_v21 = vpop.f32.mrb[2].mxu1 }
 0x1f0   :  { %215 = vmax.xlane.f32.xlu0 %v210_v19  ;;  %v279_v22 = vpop.f32.mrb[3].mxu1 }
 0x27d   :  { %v216_v23 = vpop.xlane.xlu0 %215 }
 0x27e   :  { %v217_v24 = vsub.f32 %v210_v19, %v216_v23 }
 0x280   :  { %v218_v25 = vmul.f32 1.442695, %v217_v24 }
 0x282   :  { %294 = vpow2.f32 %v218_v25 }
 0x28c   :  { %v295_v26 = vpop.eup %294 }
 0x28d   :  { %220 = vadd.xlane.f32.xlu0 %v295_v26 }
 0x31a   :  { %v221_v27 = vpop.xlane.xlu0 %220 }
 0x31b   :  { %296 = vrcp.f32 %v221_v27 }
 0x325   :  { %v297_v28 = vpop.eup %296 }
 0x326   :  { %v223_v29 = vmul.f32 %v297_v28, %v295_v26 }
 0x328   :  { %225 = vst.msk [vmem:[#allocation8] sm:$0xff] %vm224_vm3, %v223_v29 }
 0x329   :  { %375 = shalt.err (!%p372_p0)
}
 0x32a   :  { %s376_s10 = scalar_lea.hbm %s495_s5, 128 }
 0x32b   :  { %p377_p1 = scmp.ne.s32.totalorder %s495_s5, %s376_s10  ;;  %p380_p2 = scmp.lt.u32.totalorder %s376_s10, %s495_s5 }
 0x32d   :  { %p382_p3 = pnand %p380_p2, %p377_p1 }
 0x32f   :  { %385 = shalt.err (!%p382_p3)
}
 0x330   :  { %235 = dma.vmem_to_hbm [thread:$0]  %s233_s7, 128, %s495_s5, [#allocation4]  }
 0x331   :  { %390 = dma.done.wait [#allocation4], 128  }
 0x332   :  { %391 = vsyncadd [#allocation4], 4294967168 }
 0x333   :  { %239 = vsyncpa [#allocation3], 1 }
 0x334   :  { %240 = vsyncpa [#allocation6], 1 }
 0x335   :  { %241 = vsyncpa [#allocation4], 1 }

</bundles_post_ra>
